<compile_context>
chip_gen: v7x
topology: tpu7x:2x2x1
jax: 0.10.0
libtpu: 0.0.40
codegen_flags: <defaults>
</compile_context>

<pallas_src>
import numpy as np
import jax
import jax.numpy as jnp
from jax import lax
from jax.experimental import pallas as pl
from jax.experimental.pallas import tpu as pltpu

LANE = 128
_VMEM_LIMIT = 32 * 1024 * 1024   # keep scoped VMEM <= 32 MiB (v7x has 64 MiB physical)


def _round_up(x, m):
    return ((x + m - 1) // m) * m


def _pad2d(x, rows, cols):
    r, c = x.shape
    return jnp.pad(x, ((0, rows - r), (0, cols - c)))


def _tiling(n, max_tile=512):
    """Return (padded_rows, row_tile) with row_tile | padded_rows and 8-aligned."""
    if n <= max_tile:
        t = _round_up(max(n, 8), 8)
        return t, t
    return _round_up(n, max_tile), max_tile


# ----------------------------------------------------------------------------
# Kernel 1: cosine time encoding + two-dot Linear + ReLU + fused fc_self
# ----------------------------------------------------------------------------
def _encode_kernel(nfeat_ref, t_ref, freq_ref, phase_ref, w_te_x_ref, w_te_t_ref,
                   b_te_ref, w_self_ref, b_self_ref, h_self_ref, self_out_ref):
    te = jnp.cos(t_ref[...] * freq_ref[...] + phase_ref[...])            # (T, F) f32
    # two dots instead of concat + wide-K dot: same MXU FLOPs, no (T, 2F) VMEM temp
    h = (jnp.dot(nfeat_ref[...], w_te_x_ref[...],
                 preferred_element_type=jnp.float32)
         + jnp.dot(te.astype(jnp.bfloat16), w_te_t_ref[...],
                   preferred_element_type=jnp.float32)
         + b_te_ref[...])
    h = jnp.maximum(h, 0.0)
    h_self_ref[...] = h.astype(jnp.bfloat16)
    self_out_ref[...] = (jnp.dot(h.astype(jnp.bfloat16), w_self_ref[...],
                                 preferred_element_type=jnp.float32)
                         + b_self_ref[...])


def _encode_call(nfeat, t, freq, phase, w_te_x, w_te_t, b_te, w_self, b_self, tile):
    npad, fp = nfeat.shape
    fop = w_self.shape[1]
    return pl.pallas_call(
        _encode_kernel,
        out_shape=(jax.ShapeDtypeStruct((npad, fp), jnp.bfloat16),
                   jax.ShapeDtypeStruct((npad, fop), jnp.float32)),
        grid_spec=pltpu.PrefetchScalarGridSpec(
            num_scalar_prefetch=0,
            grid=(npad // tile,),
            in_specs=[
                pl.BlockSpec((tile, fp), lambda i: (i, 0)),
                pl.BlockSpec((tile, 1), lambda i: (i, 0)),
                pl.BlockSpec((1, fp), lambda i: (0, 0)),
                pl.BlockSpec((1, fp), lambda i: (0, 0)),
                pl.BlockSpec((fp, fp), lambda i: (0, 0)),
                pl.BlockSpec((fp, fp), lambda i: (0, 0)),
                pl.BlockSpec((1, fp), lambda i: (0, 0)),
                pl.BlockSpec((fp, fop), lambda i: (0, 0)),
                pl.BlockSpec((1, fop), lambda i: (0, 0)),
            ],
            out_specs=[
                pl.BlockSpec((tile, fp), lambda i: (i, 0)),
                pl.BlockSpec((tile, fop), lambda i: (i, 0)),
            ]),
        compiler_params=pltpu.CompilerParams(
            dimension_semantics=("parallel",),
            vmem_limit_bytes=_VMEM_LIMIT),
    )(nfeat, t, freq, phase, w_te_x, w_te_t, b_te, w_self, b_self)


# ----------------------------------------------------------------------------
# Kernel 2: aggregation  h_neigh = A^T @ h_self + eagg @ W_edge
#   (accumulator grid; block-sparse skip of empty A^T tiles via scalar prefetch)
# ----------------------------------------------------------------------------
def _agg_kernel(mask_ref, fk_ref, at_ref, h_self_ref, eagg_ref, w_edge_ref,
                h_neigh_ref, acc_ref):
    i = pl.program_id(0)
    k = pl.program_id(1)
    nk = pl.num_programs(1)

    @pl.when(k == 0)
    def _():
        # edge term depends only on the dst tile -> computed once per i
        acc_ref[...] = jnp.dot(eagg_ref[...], w_edge_ref[...],
                               preferred_element_type=jnp.float32)

    @pl.when(mask_ref[i * nk + k] != 0)
    def _():
        acc_ref[...] += jnp.dot(at_ref[...], h_self_ref[...],
                                preferred_element_type=jnp.float32)

    @pl.when(k == nk - 1)
    def _():
        h_neigh_ref[...] = acc_ref[...].astype(h_neigh_ref.dtype)


def _agg_call(tile_mask, fetch_k, at, h_self, eagg, w_edge, ti, tk):
    npad = at.shape[0]
    fp = h_self.shape[1]
    fep = eagg.shape[1]
    nk = npad // tk
    return pl.pallas_call(
        _agg_kernel,
        out_shape=jax.ShapeDtypeStruct((npad, fp), jnp.bfloat16),
        grid_spec=pltpu.PrefetchScalarGridSpec(
            num_scalar_prefetch=2,                 # tile-nonzero mask + fetch index (SMEM)
            grid=(npad // ti, nk),
            in_specs=[
                # empty tiles are remapped to the last nonzero k: identical consecutive
                # block indices -> Pallas skips the DMA; the dot is pl.when-guarded.
                pl.BlockSpec((ti, tk), lambda i, k, msk, fk: (i, fk[i * nk + k])),
                pl.BlockSpec((tk, fp), lambda i, k, msk, fk: (fk[i * nk + k], 0)),
                pl.BlockSpec((ti, fep), lambda i, k, msk, fk: (i, 0)),
                pl.BlockSpec((fep, fp), lambda i, k, msk, fk: (0, 0)),
            ],
            out_specs=pl.BlockSpec((ti, fp), lambda i, k, msk, fk: (i, 0)),
            scratch_shapes=[pltpu.VMEM((ti, fp), jnp.float32)]),
        compiler_params=pltpu.CompilerParams(
            dimension_semantics=("parallel", "arbitrary"),
            vmem_limit_bytes=_VMEM_LIMIT),
    )(tile_mask, fetch_k, at, h_self, eagg, w_edge)


# ----------------------------------------------------------------------------
# Kernel 3: blocked segmented cumsum (carry across tiles of one group) fused with
#           mean-normalize (pl.reciprocal), fc_neigh and the fc_self add.
#           Grid = (group, tile-within-group): group axis is parallel (v7x 2 TCs).
# ----------------------------------------------------------------------------
def _prop_out_kernel(tri_ref, hn_ref, deg_ref, self_ref, w_neigh_ref, b_neigh_ref,
                     out_ref, carry_ref):
    @pl.when(pl.program_id(1) == 0)          # first tile of each group: reset carry
    def _():
        carry_ref[...] = jnp.zeros_like(carry_ref)

    # bf16 x bf16 cumsum dot with f32 accumulation; carry kept in f32
    csum = jnp.dot(tri_ref[...], hn_ref[...],
                   preferred_element_type=jnp.float32) + carry_ref[...]
    gt = csum.shape[0]
    carry_ref[...] = csum[gt - 1:gt, :]                       # running sum for next tile

    hn = csum * pl.reciprocal(deg_ref[...], approx=True)      # mean normalize (EUP)
    out_ref[...] = (self_ref[...]
                    + jnp.dot(hn.astype(jnp.bfloat16), w_neigh_ref[...],
                              preferred_element_type=jnp.float32)
                    + b_neigh_ref[...])


def _prop_out_call(tri, hn_ord, deg_ord, self_ord, w_neigh, b_neigh, gt, lt):
    ncat, fp = hn_ord.shape
    fop = w_neigh.shape[1]
    n_groups = ncat // (gt * lt)
    return pl.pallas_call(
        _prop_out_kernel,
        out_shape=jax.ShapeDtypeStruct((ncat, fop), jnp.float32),
        grid_spec=pltpu.PrefetchScalarGridSpec(
            num_scalar_prefetch=0,
            grid=(n_groups, lt),
            in_specs=[
                pl.BlockSpec((gt, gt), lambda g, l: (0, 0)),          # tri, resident
                pl.BlockSpec((gt, fp), lambda g, l: (g * lt + l, 0)),
                pl.BlockSpec((gt, 1), lambda g, l: (g * lt + l, 0)),
                pl.BlockSpec((gt, fop), lambda g, l: (g * lt + l, 0)),
                pl.BlockSpec((fp, fop), lambda g, l: (0, 0)),
                pl.BlockSpec((1, fop), lambda g, l: (0, 0)),
            ],
            out_specs=pl.BlockSpec((gt, fop), lambda g, l: (g * lt + l, 0)),
            scratch_shapes=[pltpu.VMEM((1, fp), jnp.float32)]),
        compiler_params=pltpu.CompilerParams(
            dimension_semantics=("parallel", "arbitrary"),   # carry only lives in a group
            vmem_limit_bytes=_VMEM_LIMIT),
    )(tri, hn_ord, deg_ord, self_ord, w_neigh, b_neigh)


# ----------------------------------------------------------------------------
# Parameters
# ----------------------------------------------------------------------------
def _xavier(key, fan_in, fan_out, gain=1.0):
    bound = gain * np.sqrt(6.0 / (fan_in + fan_out))
    return jax.random.uniform(key, (fan_in, fan_out), jnp.float32, -bound, bound)


def init_params(key, in_feats, out_feats, edge_feats):
    gain = float(np.sqrt(2.0))  # calculate_gain('relu')
    ks = jax.random.split(key, 8)
    return dict(
        basis_freq=jnp.linspace(0.0, 9.0, in_feats, dtype=jnp.float32).reshape(1, -1),
        phase=jnp.zeros((1, in_feats), jnp.float32),
        w_te_x=_xavier(ks[0], in_feats, in_feats),
        w_te_t=_xavier(ks[1], in_feats, in_feats),
        b_te=jnp.zeros((1, in_feats), jnp.float32),
        w_edge=_xavier(ks[2], edge_feats, in_feats),
        b_edge=jnp.zeros((1, in_feats), jnp.float32),
        w_self=_xavier(ks[3], in_feats, out_feats, gain),
        b_self=jnp.zeros((1, out_feats), jnp.float32),
        w_neigh=_xavier(ks[4], in_feats, out_feats, gain),
        b_neigh=jnp.zeros((1, out_feats), jnp.float32),
    )


def _pack_params(params, in_feats, out_feats, edge_feats):
    """Pad to 128 lanes, cast matmul operands to bf16, fold b_edge into a spare lane."""
    fp = _round_up(in_feats, LANE)
    fop = _round_up(out_feats, LANE)
    fep = _round_up(edge_feats + 1, LANE)        # +1 spare lane carries indeg for b_edge

    w_edge = jnp.zeros((fep, fp), jnp.float32)
    w_edge = w_edge.at[:edge_feats, :in_feats].set(params["w_edge"])
    w_edge = w_edge.at[edge_feats, :in_feats].set(params["b_edge"][0])   # indeg * b_edge

    return dict(
        fp=fp, fop=fop, fep=fep,
        freq=_pad2d(params["basis_freq"], 1, fp),
        phase=_pad2d(params["phase"], 1, fp),
        w_te_x=_pad2d(params["w_te_x"], fp, fp).astype(jnp.bfloat16),
        w_te_t=_pad2d(params["w_te_t"], fp, fp).astype(jnp.bfloat16),
        b_te=_pad2d(params["b_te"], 1, fp),
        w_edge=w_edge.astype(jnp.bfloat16),
        w_self=_pad2d(params["w_self"], fp, fop).astype(jnp.bfloat16),
        b_self=_pad2d(params["b_self"], 1, fop),
        w_neigh=_pad2d(params["w_neigh"], fp, fop).astype(jnp.bfloat16),
        b_neigh=_pad2d(params["b_neigh"], 1, fop),
    )


# ----------------------------------------------------------------------------
# Forward pass (agg_type = 'mean')
# ----------------------------------------------------------------------------
def gtc_layer_forward(params, nfeat, timestamp, efeat, src, dst, degs, new_node_ids):
    n, fin = nfeat.shape
    e, fe = efeat.shape
    fout = params["w_self"].shape[1]
    pk = _pack_params(params, fin, fout, fe)
    fp, fep = pk["fp"], pk["fep"]

    npad, tn = _tiling(n, 512)
    # kernel 2: decouple dst tile (ti2) from src/reduction tile (tk2), grow the dst tile
    tk2 = tn
    ti2 = tn
    for m in (8, 4, 2):
        cand = tn * m
        if cand <= 1024 and npad % cand == 0:
            ti2 = cand
            break

    # ---- glue: lane/row padding (bf16 for the matmul operands) --------------------
    nfeat_p = _pad2d(nfeat, npad, fp).astype(jnp.bfloat16)
    t_p = _pad2d(timestamp.reshape(n, 1).astype(jnp.float32), npad, 1)
    deg_full = degs.reshape(n, 1).astype(jnp.float32)
    efeat_p = _pad2d(efeat, e, fep)

    # compressed bf16 dst<-src adjacency counts (N x E incidence never built); edge
    # features segment-summed into node space, b_edge folded via the spare indeg lane.
    # NOTE: bf16 counts are exact for per-pair edge multiplicities <= 256.
    src = src.astype(jnp.int32)
    dst = dst.astype(jnp.int32)
    at = jnp.zeros((npad, npad), jnp.bfloat16).at[dst, src].add(
        jnp.ones_like(dst, jnp.bfloat16))
    eagg = jnp.zeros((npad, fep), jnp.float32).at[dst].add(efeat_p)
    indeg = jnp.zeros((npad,), jnp.float32).at[dst].add(1.0)
    eagg = eagg.at[:, fe].set(indeg).astype(jnp.bfloat16)

    # per-(i,k) nonzero-tile mask + "k to fetch" remap table (scalar prefetch, SMEM)
    ni, nk = npad // ti2, npad // tk2
    flat_tile = (dst // ti2) * nk + (src // tk2)
    tile_counts = jnp.zeros((ni * nk,), jnp.int32).at[flat_tile].add(1)
    tile_mask = (tile_counts > 0).astype(jnp.int32)
    k_ids = jnp.broadcast_to(jnp.arange(nk, dtype=jnp.int32), (ni, nk))
    cand = jnp.where(tile_mask.reshape(ni, nk) > 0, k_ids, -1)
    fetch_k = jnp.maximum(lax.cummax(cand, axis=1), 0).astype(jnp.int32).reshape(-1)

    # ---- kernel 1: time encoding (+ fused fc_self) --------------------------------
    h_self, self_out = _encode_call(
        nfeat_p, t_p, pk["freq"], pk["phase"], pk["w_te_x"], pk["w_te_t"], pk["b_te"],
        pk["w_self"], pk["b_self"], tn)

    # ---- kernel 2: u_add_e -> sum aggregation --------------------------------------
    h_neigh = _agg_call(tile_mask, fetch_k, at, h_self, eagg, pk["w_edge"], ti2, tk2)

    # ---- glue: group-padded traversal order (static host-side metadata) -----------
    groups = [np.asarray(g, np.int64).reshape(-1) for g in new_node_ids]
    n_groups = max(len(groups), 1)
    max_len = max((len(g) for g in groups), default=1)
    gt = min(512, _round_up(max(max_len, 8), 8))
    glen = _round_up(max(max_len, 1), gt)            # every group padded to same length
    lt = glen // gt
    order = np.zeros((n_groups * glen,), np.int32)
    valid = np.zeros((n_groups * glen,), bool)
    pos = np.zeros((n,), np.int32)
    for gi, g in enumerate(groups):
        base = gi * glen
        order[base:base + len(g)] = g
        valid[base:base + len(g)] = True
        pos[g] = base + np.arange(len(g), dtype=np.int32)
    order = jnp.asarray(order)
    valid = jnp.asarray(valid)
    pos = jnp.asarray(pos)

    # TODO(synk): fuse these gathers + the inverse permutation into kernel 3 via
    # scalar-prefetched row DMA; they remain XLA gathers here.
    hn_ord = h_neigh[order]                                   # bf16 (G*glen, fp)
    deg_ord = jnp.where(valid[:, None], deg_full[order], 1.0) # pad rows -> safe recip
    self_ord = self_out[order]

    # precomputed lower-triangular cumsum operator (hoisted out of the kernel)
    tri = jnp.tril(jnp.ones((gt, gt), jnp.float32)).astype(jnp.bfloat16)

    # ---- kernel 3: segmented cumsum + mean + fc_neigh + fc_self add ----------------
    rst_ord = _prop_out_call(tri, hn_ord, deg_ord, self_ord,
                             pk["w_neigh"], pk["b_neigh"], gt, lt)

    # inverse traversal permutation, drop lane padding
    return rst_ord[pos][:, :fout]


# ----------------------------------------------------------------------------
if __name__ == "__main__":
    key = jax.random.PRNGKey(0)
    N, FIN, FOUT, E, FE = 16, 32, 32, 24, 8

    k_par, k_nf, k_ts, k_ef, k_src, k_dst, k_perm = jax.random.split(key, 7)
    params = init_params(k_par, FIN, FOUT, FE)

    nfeat = jax.random.normal(k_nf, (N, FIN), jnp.float32)
    timestamp = jax.random.uniform(k_ts, (N,), jnp.float32, 0.0, 10.0)
    efeat = jax.random.normal(k_ef, (E, FE), jnp.float32)
    src = jax.random.randint(k_src, (E,), 0, N)
    dst = jax.random.randint(k_dst, (E,), 0, N)

    # node "degree" feature (clamped in-degree so the mean divide is well-defined)
    degs = jnp.maximum(jnp.zeros((N,), jnp.float32).at[dst].add(1.0), 1.0)

    # two traversal groups (a permutation of all nodes, split in two)
    perm = np.array(jax.random.permutation(k_perm, N))
    new_node_ids = [perm[:10], perm[10:]]

    out = gtc_layer_forward(params, nfeat, timestamp, efeat, src, dst, degs,
                            new_node_ids)
    out = jax.block_until_ready(out)
    assert out.shape == (N, FOUT) and out.dtype == jnp.float32
    assert bool(jnp.all(jnp.isfinite(out)))
    print("KERNEL_OK")
</pallas_src>

<mosaic_0001>
module attributes {stable_mosaic.version = 11 : i64} {
  func.func @_encode_kernel(%arg0: i32, %arg1: memref<16x128xbf16, #tpu.memory_space<vmem>>, %arg2: memref<16x1xf32, #tpu.memory_space<vmem>>, %arg3: memref<1x128xf32, #tpu.memory_space<vmem>>, %arg4: memref<1x128xf32, #tpu.memory_space<vmem>>, %arg5: memref<128x128xbf16, #tpu.memory_space<vmem>>, %arg6: memref<128x128xbf16, #tpu.memory_space<vmem>>, %arg7: memref<1x128xf32, #tpu.memory_space<vmem>>, %arg8: memref<128x128xbf16, #tpu.memory_space<vmem>>, %arg9: memref<1x128xf32, #tpu.memory_space<vmem>>, %arg10: memref<16x128xbf16, #tpu.memory_space<vmem>>, %arg11: memref<16x128xf32, #tpu.memory_space<vmem>>) attributes {dimension_semantics = [#tpu.dimension_semantics<parallel>], iteration_bounds = array<i64: 1>, scalar_prefetch = 0 : i64, scratch_operands = 0 : i64, tpu.core_type = #tpu.core_type<tc>, window_params = [{transform_indices = @transform_0, window_bounds = array<i64: 16, 128>}, {transform_indices = @transform_1, window_bounds = array<i64: 16, 1>}, {pipeline_mode = #tpu.pipeline_mode<synchronous>, transform_indices = @transform_2, window_bounds = array<i64: 1, 128>}, {pipeline_mode = #tpu.pipeline_mode<synchronous>, transform_indices = @transform_3, window_bounds = array<i64: 1, 128>}, {pipeline_mode = #tpu.pipeline_mode<synchronous>, transform_indices = @transform_4, window_bounds = array<i64: 128, 128>}, {pipeline_mode = #tpu.pipeline_mode<synchronous>, transform_indices = @transform_5, window_bounds = array<i64: 128, 128>}, {pipeline_mode = #tpu.pipeline_mode<synchronous>, transform_indices = @transform_6, window_bounds = array<i64: 1, 128>}, {pipeline_mode = #tpu.pipeline_mode<synchronous>, transform_indices = @transform_7, window_bounds = array<i64: 128, 128>}, {pipeline_mode = #tpu.pipeline_mode<synchronous>, transform_indices = @transform_8, window_bounds = array<i64: 1, 128>}, {transform_indices = @transform_9, window_bounds = array<i64: 16, 128>}, {transform_indices = @transform_10, window_bounds = array<i64: 16, 128>}]} {
    %c0 = arith.constant 0 : index
    %c0_0 = arith.constant 0 : index
    %0 = vector.load %arg2[%c0, %c0_0] : memref<16x1xf32, #tpu.memory_space<vmem>>, vector<16x1xf32>
    %c0_1 = arith.constant 0 : index
    %c0_2 = arith.constant 0 : index
    %1 = vector.load %arg3[%c0_1, %c0_2] : memref<1x128xf32, #tpu.memory_space<vmem>>, vector<1x128xf32>
    %2 = vector.broadcast %0 : vector<16x1xf32> to vector<16x128xf32>
    %3 = vector.broadcast %1 : vector<1x128xf32> to vector<16x128xf32>
    %4 = arith.mulf %2, %3 : vector<16x128xf32>
    %c0_3 = arith.constant 0 : index
    %c0_4 = arith.constant 0 : index
    %5 = vector.load %arg4[%c0_3, %c0_4] : memref<1x128xf32, #tpu.memory_space<vmem>>, vector<1x128xf32>
    %6 = vector.broadcast %5 : vector<1x128xf32> to vector<16x128xf32>
    %7 = arith.addf %4, %6 : vector<16x128xf32>
    %8 = math.cos %7 : vector<16x128xf32>
    %c0_5 = arith.constant 0 : index
    %c0_6 = arith.constant 0 : index
    %9 = vector.load %arg1[%c0_5, %c0_6] : memref<16x128xbf16, #tpu.memory_space<vmem>>, vector<16x128xbf16>
    %c0_7 = arith.constant 0 : index
    %c0_8 = arith.constant 0 : index
    %10 = vector.load %arg5[%c0_7, %c0_8] : memref<128x128xbf16, #tpu.memory_space<vmem>>, vector<128x128xbf16>
    %cst = arith.constant dense<0.000000e+00> : vector<16x128xf32>
    %11 = tpu.matmul %9, %10, %cst {dimension_numbers = #tpu.dot_dimension_numbers<[1], [0], [0], [1], [0, 0, 1, 1], [], []>} : vector<16x128xbf16>, vector<128x128xbf16>, vector<16x128xf32> -> vector<16x128xf32>
    %12 = arith.truncf %8 : vector<16x128xf32> to vector<16x128xbf16>
    %c0_9 = arith.constant 0 : index
    %c0_10 = arith.constant 0 : index
    %13 = vector.load %arg6[%c0_9, %c0_10] : memref<128x128xbf16, #tpu.memory_space<vmem>>, vector<128x128xbf16>
    %cst_11 = arith.constant dense<0.000000e+00> : vector<16x128xf32>
    %14 = tpu.matmul %12, %13, %cst_11 {dimension_numbers = #tpu.dot_dimension_numbers<[1], [0], [0], [1], [0, 0, 1, 1], [], []>} : vector<16x128xbf16>, vector<128x128xbf16>, vector<16x128xf32> -> vector<16x128xf32>
    %15 = arith.addf %11, %14 : vector<16x128xf32>
    %c0_12 = arith.constant 0 : index
    %c0_13 = arith.constant 0 : index
    %16 = vector.load %arg7[%c0_12, %c0_13] : memref<1x128xf32, #tpu.memory_space<vmem>>, vector<1x128xf32>
    %17 = vector.broadcast %16 : vector<1x128xf32> to vector<16x128xf32>
    %18 = arith.addf %15, %17 : vector<16x128xf32>
    %cst_14 = arith.constant 0.000000e+00 : f32
    %19 = vector.broadcast %cst_14 : f32 to vector<16x128xf32>
    %20 = arith.maximumf %18, %19 : vector<16x128xf32>
    %21 = arith.truncf %20 : vector<16x128xf32> to vector<16x128xbf16>
    %c0_15 = arith.constant 0 : index
    %c0_16 = arith.constant 0 : index
    %22 = vector.load %arg10[%c0_15, %c0_16] : memref<16x128xbf16, #tpu.memory_space<vmem>>, vector<16x128xbf16>
    tpu.vector_store %arg10[%c0_15, %c0_16], %21 {strides = array<i32>} : memref<16x128xbf16, #tpu.memory_space<vmem>>, vector<16x128xbf16>,
    %23 = arith.truncf %20 : vector<16x128xf32> to vector<16x128xbf16>
    %c0_17 = arith.constant 0 : index
    %c0_18 = arith.constant 0 : index
    %24 = vector.load %arg8[%c0_17, %c0_18] : memref<128x128xbf16, #tpu.memory_space<vmem>>, vector<128x128xbf16>
    %cst_19 = arith.constant dense<0.000000e+00> : vector<16x128xf32>
    %25 = tpu.matmul %23, %24, %cst_19 {dimension_numbers = #tpu.dot_dimension_numbers<[1], [0], [0], [1], [0, 0, 1, 1], [], []>} : vector<16x128xbf16>, vector<128x128xbf16>, vector<16x128xf32> -> vector<16x128xf32>
    %c0_20 = arith.constant 0 : index
    %c0_21 = arith.constant 0 : index
    %26 = vector.load %arg9[%c0_20, %c0_21] : memref<1x128xf32, #tpu.memory_space<vmem>>, vector<1x128xf32>
    %27 = vector.broadcast %26 : vector<1x128xf32> to vector<16x128xf32>
    %28 = arith.addf %25, %27 : vector<16x128xf32>
    %c0_22 = arith.constant 0 : index
    %c0_23 = arith.constant 0 : index
    %29 = vector.load %arg11[%c0_22, %c0_23] : memref<16x128xf32, #tpu.memory_space<vmem>>, vector<16x128xf32>
    tpu.vector_store %arg11[%c0_22, %c0_23], %28 {strides = array<i32>} : memref<16x128xf32, #tpu.memory_space<vmem>>, vector<16x128xf32>,
    return
  }
  func.func @transform_0(%arg0: i32) -> (i32, i32) {
    %c0_i32 = arith.constant 0 : i32
    %c0_i32_0 = arith.constant 0 : i32
    return %arg0, %c0_i32 : i32, i32
  }
  func.func @transform_1(%arg0: i32) -> (i32, i32) {
    %c0_i32 = arith.constant 0 : i32
    %c0_i32_0 = arith.constant 0 : i32
    return %arg0, %c0_i32 : i32, i32
  }
  func.func @transform_2(%arg0: i32) -> (i32, i32) {
    %c0_i32 = arith.constant 0 : i32
    %c0_i32_0 = arith.constant 0 : i32
    %c0_i32_1 = arith.constant 0 : i32
    return %c0_i32, %c0_i32_0 : i32, i32
  }
  func.func @transform_3(%arg0: i32) -> (i32, i32) {
    %c0_i32 = arith.constant 0 : i32
    %c0_i32_0 = arith.constant 0 : i32
    %c0_i32_1 = arith.constant 0 : i32
    return %c0_i32, %c0_i32_0 : i32, i32
  }
  func.func @transform_4(%arg0: i32) -> (i32, i32) {
    %c0_i32 = arith.constant 0 : i32
    %c0_i32_0 = arith.constant 0 : i32
    %c0_i32_1 = arith.constant 0 : i32
    return %c0_i32, %c0_i32_0 : i32, i32
  }
  func.func @transform_5(%arg0: i32) -> (i32, i32) {
    %c0_i32 = arith.constant 0 : i32
    %c0_i32_0 = arith.constant 0 : i32
    %c0_i32_1 = arith.constant 0 : i32
    return %c0_i32, %c0_i32_0 : i32, i32
  }
  func.func @transform_6(%arg0: i32) -> (i32, i32) {
    %c0_i32 = arith.constant 0 : i32
    %c0_i32_0 = arith.constant 0 : i32
    %c0_i32_1 = arith.constant 0 : i32
    return %c0_i32, %c0_i32_0 : i32, i32
  }
  func.func @transform_7(%arg0: i32) -> (i32, i32) {
    %c0_i32 = arith.constant 0 : i32
    %c0_i32_0 = arith.constant 0 : i32
    %c0_i32_1 = arith.constant 0 : i32
    return %c0_i32, %c0_i32_0 : i32, i32
  }
  func.func @transform_8(%arg0: i32) -> (i32, i32) {
    %c0_i32 = arith.constant 0 : i32
    %c0_i32_0 = arith.constant 0 : i32
    %c0_i32_1 = arith.constant 0 : i32
    return %c0_i32, %c0_i32_0 : i32, i32
  }
  func.func @transform_9(%arg0: i32) -> (i32, i32) {
    %c0_i32 = arith.constant 0 : i32
    %c0_i32_0 = arith.constant 0 : i32
    return %arg0, %c0_i32 : i32, i32
  }
  func.func @transform_10(%arg0: i32) -> (i32, i32) {
    %c0_i32 = arith.constant 0 : i32
    %c0_i32_0 = arith.constant 0 : i32
    return %arg0, %c0_i32 : i32, i32
  }
}

</mosaic_0001>

<bundles_post_ra>
// kernel: tpu_custom_call.1
= control target key start
LH: loop header
LB: loop body
LE: loop exit
PB: predicated region body
PF: predicated region fallthrough
CT: control target
= control target key end

     0   :  { %16 = vsyncpa [#allocation3], 0  ;;  %s1293_s0 = inlined_call_operand.vmem [shape: bf16[16,128], index: 0, kind: input, shape index: {}]   ;;  %s1294_s1 = inlined_call_operand.vmem [shape: f32[16,1], index: 1, kind: input, shape index: {}]   ;;  %s1295_s2 = inlined_call_operand.vmem [shape: f32[1,128], index: 2, kind: input, shape index: {}]   ;;  %s1296_s3 = inlined_call_operand.vmem [shape: f32[1,128], index: 3, kind: input, shape index: {}]   ;;  %s1297_s4 = inlined_call_operand.hbm [shape: bf16[128,128], index: 4, kind: input, shape index: {}]   ;;  %s1298_s5 = inlined_call_operand.hbm [shape: bf16[128,128], index: 5, kind: input, shape index: {}]   ;;  %s1299_s6 = inlined_call_operand.vmem [shape: f32[1,128], index: 6, kind: input, shape index: {}]   ;;  %s1300_s7 = inlined_call_operand.hbm [shape: bf16[128,128], index: 7, kind: input, shape index: {}]   ;;  %s1301_s8 = inlined_call_operand.vmem [shape: f32[1,128], index: 8, kind: input, shape index: {}]   ;;  %s1302_s9 = inlined_call_operand.hbm [shape: bf16[16,128], index: 9, kind: output, shape index: {0}]   ;;  %s1303_s10 = inlined_call_operand.hbm [shape: f32[16,128], index: 10, kind: output, shape index: {1}]  }
   0x1   :  { %17 = vsyncpa [#allocation6], 0 }
   0x2   :  { %18 = vsyncpa [#allocation4], 0 }
   0x3   :  { %19 = vsyncpa [#allocation10], 0  ;;  %s1013_s13 = smov [#allocation5]   ;;  %s1014_s15 = smov [#allocation2]  }
   0x4   :  { %s45_s14 = sshll.u32 %s1013_s13, 4  ;;  %s33_s16 = sshll.u32 %s1014_s15, 4  ;;  %s46_s14 = int_to_ptr.vmem [resolvable:$true] %s45_s14  ;;  %s1086_s16 = int_to_ptr.vmem [resolvable:$true] %s33_s16 }
   0x5   :  { %s895_s19 = scalar_lea.hbm %s1298_s5, 1024 }
   0x6   :  { %p896_p0 = scmp.ne.s32.totalorder %s1298_s5, %s895_s19  ;;  %p899_p1 = scmp.lt.u32.totalorder %s895_s19, %s1298_s5 }
   0x8   :  { %p901_p2 = pnand %p899_p1, %p896_p0 }
   0xa   :  { %904 = shalt.err (!%p901_p2)
}
   0xb   :  { %s905_s24 = scalar_lea.vmem %s46_s14, 1024  ;;  %p910_p4 = scmp.lt.s32.totalorder %s46_s14, %s46_s14 }
   0xc   :  { %p906_p3 = scmp.ne.s32.totalorder %s46_s14, %s905_s24  ;;  %p911_p5 = scmp.lt.s32.totalorder %s905_s24, %s905_s24 }
   0xe   :  { %p912_p6 = por %p911_p5, %p910_p4 }
  0x10   :  { %p913_p7 = pnand %p912_p6, %p906_p3 }
  0x12   :  { %916 = shalt.err (!%p913_p7)
}
  0x13   :  { %s1015_s25 = smov 64   ;;  %s1016_s26 = smov 4  }
  0x14   :  { %51 = dma.hbm_to_vmem [thread:$0]  %s1298_s5, 1024, %s46_s14, [#allocation6], %s1015_s25, %s1015_s25, %s1016_s26  }
  0x15   :  { %s917_s11 = scalar_lea.hbm %s1297_s4, 1024 }
  0x16   :  { %p918_p8 = scmp.ne.s32.totalorder %s1297_s4, %s917_s11  ;;  %p921_p9 = scmp.lt.u32.totalorder %s917_s11, %s1297_s4 }
  0x18   :  { %p923_p10 = pnand %p921_p9, %p918_p8 }
  0x1a   :  { %926 = shalt.err (!%p923_p10)
}
  0x1b   :  { %s927_s18 = scalar_lea.vmem %s1086_s16, 1024  ;;  %p932_p12 = scmp.lt.s32.totalorder %s1086_s16, %s1086_s16 }
  0x1c   :  { %p928_p11 = scmp.ne.s32.totalorder %s1086_s16, %s927_s18  ;;  %p933_p13 = scmp.lt.s32.totalorder %s927_s18, %s927_s18 }
  0x1e   :  { %p934_p0 = por %p933_p13, %p932_p12 }
  0x20   :  { %p935_p1 = pnand %p934_p0, %p928_p11 }
  0x22   :  { %938 = shalt.err (!%p935_p1)
}
  0x23   :  { %39 = dma.hbm_to_vmem [thread:$0]  %s1297_s4, 1024, %s1086_s16, [#allocation3], %s1015_s25, %s1015_s25, %s1016_s26  }
  0x24   :  { %s1017_s19 = smov [#allocation7]   ;;  %s939_s23 = scalar_lea.hbm %s1300_s7, 1024 }
  0x25   :  { %s59_s20 = sshll.u32 %s1017_s19, 4  ;;  %p940_p2 = scmp.ne.s32.totalorder %s1300_s7, %s939_s23  ;;  %s60_s20 = int_to_ptr.vmem [resolvable:$true] %s59_s20 }
  0x26   :  { %p943_p3 = scmp.lt.u32.totalorder %s939_s23, %s1300_s7 }
  0x28   :  { %p945_p4 = pnand %p943_p3, %p940_p2 }
  0x2a   :  { %948 = shalt.err (!%p945_p4)
}
  0x2b   :  { %s949_s30 = scalar_lea.vmem %s60_s20, 1024  ;;  %p954_p6 = scmp.lt.s32.totalorder %s60_s20, %s60_s20 }
  0x2c   :  { %p950_p5 = scmp.ne.s32.totalorder %s60_s20, %s949_s30  ;;  %p955_p7 = scmp.lt.s32.totalorder %s949_s30, %s949_s30 }
  0x2e   :  { %p956_p8 = por %p955_p7, %p954_p6 }
  0x30   :  { %p957_p9 = pnand %p956_p8, %p950_p5 }
  0x32   :  { %960 = shalt.err (!%p957_p9)
}
  0x33   :  { %65 = dma.hbm_to_vmem [thread:$0]  %s1300_s7, 1024, %s60_s20, [#allocation6], %s1015_s25, %s1015_s25, %s1016_s26  }
  0x34   :  { %1005 = dma.done.wait [#allocation3], 1024  }
  0x35   :  { %1006 = vsyncadd [#allocation3], 4294966272 }
  0x36   :  { %1007 = dma.done.wait [#allocation6], 2048  }
  0x37   :  { %1008 = vsyncadd [#allocation6], 4294965248  ;;  %v1018_v0 = vmov 0   ;;  %v78_v1 = vld [vmem:[%s1294_s1] sm:$0xff]  ;;  %v79_v2 = vld [vmem:[%s1294_s1 + $0x8] sm:$0xff]  ;;  %v1019_v4 = vmov 0.0  }
  0x38   :  { %861 = vset.pattern.permute.xlu0 %v1018_v0  ;;  %v862_v3 = vld [vmem:[#allocation2] sm:$0xff]   ;;  %795 = vmatprep.subr.bf16.mxu1 %v1019_v4  ;;  %v864_v6 = vld [vmem:[#allocation2 + $0x8] sm:$0xff]   ;;  %v866_v8 = vld [vmem:[#allocation2 + $0x10] sm:$0xff]   ;;  %vm1020_vm0 = vmmov 0   ;;  %v1021_v45 = vmov 683565275  }
  0x39   :  { %83 = vperm.xlu0 %861, %v78_v1   ;;  %775 = vmatprep.subr.bf16.mxu0 %v1019_v4  ;;  %v863_v5 = vld [vmem:[#allocation5] sm:$0xff]   ;;  %v865_v7 = vld [vmem:[#allocation5 + $0x8] sm:$0xff]   ;;  %v867_v9 = vld [vmem:[#allocation5 + $0x10] sm:$0xff]   ;;  %v1022_v49 = vmov 2475754826  }
  0x3a   :  { %796 = vmatpush3.bf16.msra.mxu1 %v862_v3  ;;  %776 = vmatpush3.bf16.msra.mxu0 %v863_v5  ;;  %v868_v10 = vld [vmem:[#allocation2 + $0x18] sm:$0xff]   ;;  %v870_v12 = vld [vmem:[#allocation2 + $0x20] sm:$0xff]   ;;  %v872_v14 = vld [vmem:[#allocation2 + $0x28] sm:$0xff]   ;;  %v1023_v51 = vmov 2131351028  }
  0x3b   :  { %797 = vmatprep.subr.bf16.mxu1 %v1019_v4  ;;  %777 = vmatprep.subr.bf16.mxu0 %v1019_v4  ;;  %v869_v11 = vld [vmem:[#allocation5 + $0x18] sm:$0xff]   ;;  %v871_v13 = vld [vmem:[#allocation5 + $0x20] sm:$0xff]   ;;  %v873_v15 = vld [vmem:[#allocation5 + $0x28] sm:$0xff]   ;;  %v1024_v53 = vmov 2102212464  }
  0x3c   :  { %811 = vmatprep.mubr.msk.bf16.mxu1 %vm1020_vm0, %v1019_v4  ;;  %791 = vmatprep.mubr.msk.bf16.mxu0 %vm1020_vm0, %v1019_v4  ;;  %v874_v16 = vld [vmem:[#allocation2 + $0x30] sm:$0xff]   ;;  %v876_v18 = vld [vmem:[#allocation2 + $0x38] sm:$0xff]   ;;  %v878_v20 = vld [vmem:[%s1293_s0] sm:$0xff]   ;;  %v1025_v55 = vmov 920167782  }
  0x3d   :  { %88 = vperm.xlu0 %861, %v79_v2   ;;  %v875_v17 = vld [vmem:[#allocation5 + $0x30] sm:$0xff]   ;;  %v877_v19 = vld [vmem:[#allocation5 + $0x38] sm:$0xff]   ;;  %v702_v21 = vld [vmem:[%s1295_s2] ss:$0 sm:$0xff]  ;;  %v1026_v62 = vmov 1326507024  }
  0x3e   :  { %798 = vmatpush3.bf16.msra.mxu1 %v864_v6  ;;  %778 = vmatpush3.bf16.msra.mxu0 %v865_v7  ;;  %v703_v22 = vld [vmem:[%s1296_s3] ss:$0 sm:$0xff]  ;;  %s1027_s3 = smov [#allocation8]  }
  0x3f   :  { %799 = vmatprep.subr.bf16.mxu1 %v1019_v4  ;;  %779 = vmatprep.subr.bf16.mxu0 %v1019_v4  ;;  %s673_s19 = sshll.u32 %s1027_s3, 4  ;;  %s674_s19 = int_to_ptr.vmem [resolvable:$true] %s673_s19 }
  0x40   :  { %s961_s20 = scalar_lea.vmem %s674_s19, 128  ;;  %p966_p11 = scmp.lt.s32.totalorder %s674_s19, %s674_s19 }
  0x41   :  { %p962_p10 = scmp.ne.s32.totalorder %s674_s19, %s961_s20  ;;  %p967_p12 = scmp.lt.s32.totalorder %s961_s20, %s961_s20 }
  0x42   :  { %800 = vmatpush3.bf16.msra.mxu1 %v866_v8  ;;  %780 = vmatpush3.bf16.msra.mxu0 %v867_v9 }
  0x43   :  { %801 = vmatprep.subr.bf16.mxu1 %v1019_v4  ;;  %781 = vmatprep.subr.bf16.mxu0 %v1019_v4  ;;  %p968_p13 = por %p967_p12, %p966_p11 }
  0x45   :  { %p969_p0 = pnand %p968_p13, %p962_p10 }
  0x46   :  { %802 = vmatpush3.bf16.msra.mxu1 %v868_v10  ;;  %782 = vmatpush3.bf16.msra.mxu0 %v869_v11 }
  0x47   :  { %803 = vmatprep.subr.bf16.mxu1 %v1019_v4  ;;  %783 = vmatprep.subr.bf16.mxu0 %v1019_v4 }
  0x4a   :  { %804 = vmatpush3.bf16.msra.mxu1 %v870_v12  ;;  %784 = vmatpush3.bf16.msra.mxu0 %v871_v13 }
  0x4b   :  { %805 = vmatprep.subr.bf16.mxu1 %v1019_v4  ;;  %785 = vmatprep.subr.bf16.mxu0 %v1019_v4 }
  0x4e   :  { %806 = vmatpush3.bf16.msra.mxu1 %v872_v14  ;;  %786 = vmatpush3.bf16.msra.mxu0 %v873_v15 }
  0x4f   :  { %807 = vmatprep.subr.bf16.mxu1 %v1019_v4  ;;  %787 = vmatprep.subr.bf16.mxu0 %v1019_v4 }
  0x52   :  { %808 = vmatpush3.bf16.msra.mxu1 %v874_v16  ;;  %788 = vmatpush3.bf16.msra.mxu0 %v875_v17 }
  0x53   :  { %809 = vmatprep.subr.bf16.mxu1 %v1019_v4  ;;  %789 = vmatprep.subr.bf16.mxu0 %v1019_v4 }
  0x56   :  { %810 = vmatpush3.bf16.msra.mxu1 %v876_v18  ;;  %790 = vmatpush3.bf16.msra.mxu0 %v877_v19 }
  0x57   :  { %815 = vmatprep.subr.bf16.mxu0 %v1019_v4 }
  0x59   :  { %812 = vmatmul.mubr.bf16.vlgmr.msra.gmra.mrb[0].mxu1 %v878_v20 }
  0xb8   :  { %v84_v23 = vpop.permute.xlu0 %83 }
  0xb9   :  { %v97_v24 = vmul.f32 %v702_v21, %v84_v23 }
  0xbb   :  { %v1174_v25 = vadd.f32 %v703_v22, %v97_v24 }
  0xbc   :  { %v89_v26 = vpop.permute.xlu0 %88 }
  0xbd   :  { %v108_v27 = vand.u32 2147483647, %v1174_v25  ;;  %v111_v28 = vand.u32 2139095040, %v1174_v25  ;;  %v98_v29 = vmul.f32 %v702_v21, %v89_v26  ;;  %vm110_vm15 = vcmp.lt.s32.totalorder %v1174_v25, 0 }
  0xbf   :  { %v112_v30 = vshrl.u32 %v111_v28, 23  ;;  %v1178_v31 = vadd.f32 %v703_v22, %v98_v29  ;;  %v115_v32 = vand.u32 8388607, %v108_v27 }
  0xc1   :  { %v704_v33 = vadd.s32 4294967169, %v112_v30  ;;  %v214_v34 = vand.u32 2139095040, %v1178_v31  ;;  %v116_v36 = vor.u32 8388608, %v115_v32  ;;  %v211_v38 = vand.u32 2147483647, %v1178_v31 }
  0xc3   :  { %v118_v35 = vadd.s32 1, %v704_v33  ;;  %v215_v37 = vshrl.u32 %v214_v34, 23  ;;  %v1184_v43 = vshll.u32 %v116_v36, 8  ;;  %v218_v47 = vand.u32 8388607, %v211_v38 }
  0xc5   :  { %vm119_vm1 = vcmp.gt.s32.totalorder %v118_v35, 0  ;;  %v708_v40 = vadd.s32 4294967169, %v215_v37  ;;  %v219_v14 = vor.u32 8388608, %v218_v47 }
  0xc6   :  { %v120_v39 = vsel %vm119_vm1, %v118_v35, 0  ;;  %vm1232_vm1 = vcmp.le.f32.partialorder %v108_v27, 0.7853982 }
  0xc7   :  { %v121_v41 = vshrl.u32 %v120_v39, 5  ;;  %v122_v42 = vand.u32 31, %v120_v39  ;;  %v221_v48 = vadd.s32 1, %v708_v40  ;;  %v259_v29 = vshll.u32 %v219_v14, 8 }
  0xc9   :  { %v123_v44 = vsub.s32 32, %v122_v42  ;;  %v125_v46 = vshll.u32 %v1021_v45, %v122_v42  ;;  %v128_v50 = vshll.u32 %v1022_v49, %v122_v42  ;;  %v131_v52 = vshll.u32 %v1023_v51, %v122_v42 }
  0xca   :  { %v134_v54 = vshll.u32 %v1024_v53, %v122_v42  ;;  %v137_v56 = vshll.u32 %v1025_v55, %v122_v42  ;;  %vm140_vm2 = vcmp.lt.s32.totalorder %v121_v41, 1  ;;  %vm142_vm3 = vcmp.lt.s32.totalorder %v121_v41, 3 }
  0xcb   :  { %v126_v57 = vshrl.u32 %v1022_v49, %v123_v44  ;;  %v129_v58 = vshrl.u32 %v1023_v51, %v123_v44  ;;  %v132_v59 = vshrl.u32 %v1024_v53, %v123_v44  ;;  %v124_v60 = vshrl.u32 %v1021_v45, %v123_v44 }
  0xcc   :  { %v135_v61 = vshrl.u32 %v1025_v55, %v123_v44  ;;  %v138_v63 = vshrl.u32 %v1026_v62, %v123_v44  ;;  %vm222_vm4 = vcmp.gt.s32.totalorder %v221_v48, 0  ;;  %vm143_vm5 = vcmp.lt.s32.totalorder %v121_v41, 4 }
  0xcd   :  { %v127_v0 = vor.u32 %v126_v57, %v125_v46  ;;  %v130_v1 = vor.u32 %v129_v58, %v128_v50  ;;  %v133_v2 = vor.u32 %v132_v59, %v131_v52  ;;  %v223_v6 = vsel %vm222_vm4, %v221_v48, 0 }
  0xce   :  { %v136_v3 = vor.u32 %v135_v61, %v134_v54  ;;  %v139_v5 = vor.u32 %v138_v63, %v137_v56  ;;  %vm141_vm6 = vcmp.lt.s32.totalorder %v121_v41, 2  ;;  %v225_v17 = vand.u32 31, %v223_v6 }
  0xcf   :  { %v144_v7 = vsel %vm140_vm2, %v124_v60, %v127_v0  ;;  %v145_v8 = vsel %vm143_vm5, %v133_v2, 2102212464  ;;  %v148_v9 = vsel %vm140_vm2, %v127_v0, %v130_v1  ;;  %v152_v10 = vsel %vm140_vm2, %v130_v1, %v133_v2 }
  0xd0   :  { %v146_v11 = vsel %vm142_vm3, %v130_v1, %v145_v8  ;;  %v149_v12 = vsel %vm143_vm5, %v136_v3, 920167782  ;;  %v153_v13 = vsel %vm143_vm5, %v139_v5, 1326507024  ;;  %v224_v26 = vshrl.u32 %v223_v6, 5 }
  0xd1   :  { %v150_v15 = vsel %vm142_vm3, %v133_v2, %v149_v12  ;;  %v154_v16 = vsel %vm142_vm3, %v136_v3, %v153_v13  ;;  %v147_v18 = vsel %vm141_vm6, %v144_v7, %v146_v11  ;;  %v226_v28 = vsub.s32 32, %v225_v17 }
  0xd2   :  { %v151_v19 = vsel %vm141_vm6, %v148_v9, %v150_v15  ;;  %v155_v20 = vsel %vm141_vm6, %v152_v10, %v154_v16  ;;  %v163_v30 = vmul.u32 %v1184_v43, %v147_v18  ;;  %v228_v32 = vshll.u32 %v1021_v45, %v225_v17 }
  0xd3   :  { %v1197_v21 = vmul.u32.u64.low %v1184_v43, %v155_v20  ;;  %v1198_v22 = vmul.u32.u64.high %v1184_v43, %v155_v20, %v1197_v21  ;;  %v1201_v23 = vmul.u32.u64.low %v1184_v43, %v151_v19  ;;  %v1202_v24 = vmul.u32.u64.high %v1184_v43, %v151_v19, %v1201_v23 }
  0xd4   :  { %v231_v33 = vshll.u32 %v1022_v49, %v225_v17  ;;  %v234_v34 = vshll.u32 %v1023_v51, %v225_v17  ;;  %v229_v35 = vshrl.u32 %v1022_v49, %v226_v28  ;;  %v232_v36 = vshrl.u32 %v1023_v51, %v226_v28 }
  0xd5   :  { %v235_v37 = vshrl.u32 %v1024_v53, %v226_v28  ;;  %v237_v39 = vshll.u32 %v1024_v53, %v225_v17  ;;  %vm165_vm7 = vc.u32 %v1198_v22, %v1201_v23  ;;  %v166_v40 = vadd.s32 1, %v1202_v24 }
  0xd6   :  { %v238_v41 = vshrl.u32 %v1025_v55, %v226_v28  ;;  %v240_v42 = vshll.u32 %v1025_v55, %v225_v17  ;;  %v230_v44 = vor.u32 %v229_v35, %v228_v32  ;;  %v233_v46 = vor.u32 %v232_v36, %v231_v33 }
  0xd7   :  { %v236_v47 = vor.u32 %v235_v37, %v234_v34  ;;  %v241_v48 = vshrl.u32 %v1026_v62, %v226_v28  ;;  %v167_v43 = vsel %vm165_vm7, %v166_v40, %v1202_v24  ;;  %vm243_vm8 = vcmp.lt.s32.totalorder %v224_v26, 1 }
  0xd8   :  { %v239_v50 = vor.u32 %v238_v41, %v237_v39  ;;  %vm246_vm9 = vcmp.lt.s32.totalorder %v224_v26, 4  ;;  %v168_v49 = vadd.s32 %v167_v43, %v163_v30  ;;  %vm245_vm10 = vcmp.lt.s32.totalorder %v224_v26, 3 }
  0xd9   :  { %v242_v51 = vor.u32 %v241_v48, %v240_v42  ;;  %v248_v52 = vsel %vm246_vm9, %v236_v47, 2102212464  ;;  %v227_v53 = vshrl.u32 %v1021_v45, %v226_v28  ;;  %v251_v54 = vsel %vm243_vm8, %v230_v44, %v233_v46 }
  0xda   :  { %v252_v56 = vsel %vm246_vm9, %v239_v50, 920167782  ;;  %v255_v57 = vsel %vm243_vm8, %v233_v46, %v236_v47  ;;  %v169_v58 = vadd.s32 536870912, %v168_v49  ;;  %vm244_vm11 = vcmp.lt.s32.totalorder %v224_v26, 2 }
  0xdb   :  { %v253_v55 = vsel %vm245_vm10, %v236_v47, %v252_v56  ;;  %v256_v59 = vsel %vm246_vm9, %v242_v51, 1326507024  ;;  %v247_v60 = vsel %vm243_vm8, %v227_v53, %v230_v44  ;;  %v249_v61 = vsel %vm245_vm10, %v233_v46, %v248_v52 }
  0xdc   :  { %v254_v62 = vsel %vm244_vm11, %v251_v54, %v253_v55  ;;  %v257_v63 = vsel %vm245_vm10, %v239_v50, %v256_v59  ;;  %v1212_v0 = vshrl.u32 %v169_v58, 30  ;;  %v250_v7 = vsel %vm244_vm11, %v247_v60, %v249_v61 }
  0xdd   :  { %v258_v1 = vsel %vm244_vm11, %v255_v57, %v257_v63  ;;  %v1214_v2 = vmul.u32.u64.low %v259_v29, %v254_v62  ;;  %v1215_v3 = vmul.u32.u64.high %v259_v29, %v254_v62, %v1214_v2  ;;  %v266_v10 = vmul.u32 %v259_v29, %v250_v7 }
  0xde   :  { %v1217_v5 = vmul.u32.u64.low %v259_v29, %v258_v1  ;;  %v1218_v6 = vmul.u32.u64.high %v259_v29, %v258_v1, %v1217_v5  ;;  %v171_v45 = vshll.u32 %v1212_v0, 30  ;;  %v164_v24 = vadd.s32 %v1201_v23, %v1198_v22 }
  0xdf   :  { %v269_v9 = vadd.s32 1, %v1215_v3  ;;  %v194_v60 = vsub.s32 4, %v1212_v0  ;;  %vm213_vm2 = vcmp.lt.s32.totalorder %v1178_v31, 0  ;;  %vm212_vm3 = vcmp.le.f32.partialorder %v211_v38, 0.7853982 }
  0xe0   :  { %v172_v8 = vsub.s32 %v168_v49, %v171_v45  ;;  %vm268_vm12 = vc.u32 %v1218_v6, %v1214_v2  ;;  %v267_v47 = vadd.s32 %v1214_v2, %v1218_v6  ;;  %vm200_vm10 = vweird.f32 %v1174_v25 }
  0xe1   :  { %v270_v12 = vsel %vm268_vm12, %v269_v9, %v1215_v3  ;;  %v195_v63 = vsel %vm110_vm15, %v194_v60, %v1212_v0  ;;  %vm303_vm11 = vweird.f32 %v1178_v31 }
  0xe2   :  { %v174_v11 = vsub.s32 0, %v172_v8  ;;  %v271_v13 = vadd.s32 %v270_v12, %v266_v10  ;;  %v197_v3 = vsel %vm1232_vm1, 0, %v195_v63 }
  0xe3   :  { %v201_v45 = vand.u32 3, %v197_v3 }
  0xe4   :  { %v705_v14 = vmin.u32 %v174_v11, %v172_v8  ;;  %v272_v15 = vadd.s32 536870912, %v271_v13 }
  0xe5   :  { %vm203_vm4 = vcmp.eq.s32.totalorder %v201_v45, 0  ;;  %vm206_vm5 = vcmp.eq.s32.totalorder %v201_v45, 2  ;;  %vm202_vm6 = vcmp.lt.s32.totalorder %v201_v45, 2 }
  0xe6   :  { %v176_v16 = vclz %v705_v14  ;;  %v273_v17 = vshrl.u32 %v272_v15, 30 }
  0xe8   :  { %v706_v18 = vadd.s32 4294967294, %v176_v16  ;;  %v274_v19 = vshll.u32 %v273_v17, 30  ;;  %v297_v27 = vsub.s32 4, %v273_v17 }
  0xea   :  { %vm707_vm13 = vcmp.lt.s32.totalorder %v706_v18, 0  ;;  %v275_v21 = vsub.s32 %v271_v13, %v274_v19  ;;  %v298_v5 = vsel %vm213_vm2, %v297_v27, %v273_v17 }
  0xeb   :  { %v179_v20 = vsel %vm707_vm13, 0, %v706_v18  ;;  %v300_v7 = vsel %vm212_vm3, 0, %v298_v5 }
  0xec   :  { %v180_v26 = vsub.s32 32, %v179_v20  ;;  %v184_v28 = vsub.s32 4294967266, %v179_v20  ;;  %v277_v29 = vsub.s32 0, %v275_v21  ;;  %v181_v30 = vshll.u32 %v172_v8, %v179_v20 }
  0xed   :  { %v304_v38 = vand.u32 3, %v300_v7 }
  0xee   :  { %v182_v32 = vshrl.u32 %v164_v24, %v180_v26  ;;  %v185_v33 = vadd.s32 127, %v184_v28  ;;  %v709_v34 = vmin.u32 %v277_v29, %v275_v21  ;;  %v880_v26 = vld [vmem:[#allocation7 + $0x8] sm:$0xff]   ;;  %v881_v28 = vld [vmem:[#allocation7 + $0x10] sm:$0xff]  }
  0xef   :  { %vm309_vm7 = vcmp.eq.s32.totalorder %v304_v38, 2  ;;  %vm306_vm8 = vcmp.eq.s32.totalorder %v304_v38, 0  ;;  %vm305_vm9 = vcmp.lt.s32.totalorder %v304_v38, 2 }
  0xf0   :  { %v183_v35 = vor.u32 %v182_v32, %v181_v30  ;;  %v186_v36 = vshll.u32 %v185_v33, 23  ;;  %v279_v37 = vclz %v709_v34  ;;  %v884_v32 = vld [vmem:[#allocation7 + $0x28] sm:$0xff]  }
  0xf2   :  { %v187_v39 = vor.u32 4788187, %v186_v36  ;;  %v710_v40 = vadd.s32 4294967294, %v279_v37  ;;  %v190_v42 = vcvt.s32.f32 %v183_v35  ;;  %v885_v35 = vld [vmem:[#allocation7 + $0x30] sm:$0xff]   ;;  %v886_v36 = vld [vmem:[#allocation7 + $0x38] sm:$0xff]  }
  0xf4   :  { %v188_v41 = vand.u32 2147483647, %v187_v39  ;;  %vm711_vm14 = vcmp.lt.s32.totalorder %v710_v40, 0  ;;  %v729_v39 = vld [vmem:[%s1299_s6] ss:$0 sm:$0xff] }
  0xf5   :  { %v282_v46 = vsel %vm711_vm14, 0, %v710_v40 }
  0xf6   :  { %v191_v44 = vmul.f32 %v190_v42, %v188_v41  ;;  %v283_v22 = vsub.s32 32, %v282_v46  ;;  %v287_v23 = vsub.s32 4294967266, %v282_v46  ;;  %v284_v43 = vshll.u32 %v275_v21, %v282_v46  ;;  %v879_v21 = vld [vmem:[#allocation7] sm:$0xff]  }
  0xf8   :  { %v192_v48 = vxor.u32 2147483648, %v191_v44  ;;  %v285_v50 = vshrl.u32 %v267_v47, %v283_v22  ;;  %v288_v49 = vadd.s32 127, %v287_v23 }
  0xfa   :  { %v193_v51 = vsel %vm110_vm15, %v192_v48, %v191_v44  ;;  %v286_v52 = vor.u32 %v285_v50, %v284_v43  ;;  %v289_v53 = vshll.u32 %v288_v49, 23 }
  0xfb   :  { %v196_v56 = vsel %vm1232_vm1, %v1174_v25, %v193_v51  ;;  %v882_v25 = vld [vmem:[#allocation7 + $0x18] sm:$0xff]  }
  0xfc   :  { %v290_v57 = vor.u32 4788187, %v289_v53  ;;  %v293_v55 = vcvt.s32.f32 %v286_v52  ;;  %887 = vcosq.f32 %v196_v56 }
  0xfd   :  { %889 = vsinq.f32 %v196_v56 }
  0xfe   :  { %v291_v58 = vand.u32 2147483647, %v290_v57 }
 0x100   :  { %v294_v59 = vmul.f32 %v293_v55, %v291_v58 }
 0x102   :  { %v295_v61 = vxor.u32 2147483648, %v294_v59 }
 0x104   :  { %v296_v62 = vsel %vm213_vm2, %v295_v61, %v294_v59 }
 0x105   :  { %v299_v1 = vsel %vm212_vm3, %v1178_v31, %v296_v62  ;;  %v883_v31 = vld [vmem:[#allocation7 + $0x20] sm:$0xff]  }
 0x106   :  { %891 = vcosq.f32 %v299_v1  ;;  %v888_v2 = vpop.eup %887 }
 0x107   :  { %893 = vsinq.f32 %v299_v1  ;;  %v890_v6 = vpop.eup %889  ;;  %v207_v9 = vxor.u32 2147483648, %v888_v2 }
 0x108   :  { %v204_v8 = vxor.u32 2147483648, %v890_v6 }
 0x109   :  { %v208_v0 = vsel %vm206_vm5, %v207_v9, %v890_v6 }
 0x10a   :  { %v205_v11 = vsel %vm203_vm4, %v888_v2, %v204_v8 }
 0x10b   :  { %v209_v15 = vsel %vm202_vm6, %v205_v11, %v208_v0 }
 0x10c   :  { %v210_v19 = vsel %vm200_vm10, nan, %v209_v15 }
 0x110   :  { %v892_v10 = vpop.eup %891 }
 0x111   :  { %v894_v12 = vpop.eup %893  ;;  %v310_v13 = vxor.u32 2147483648, %v892_v10 }
 0x112   :  { %v307_v14 = vxor.u32 2147483648, %v894_v12 }
 0x113   :  { %v311_v16 = vsel %vm309_vm7, %v310_v13, %v894_v12 }
 0x114   :  { %v308_v17 = vsel %vm306_vm8, %v892_v10, %v307_v14 }
 0x115   :  { %v312_v18 = vsel %vm305_vm9, %v308_v17, %v311_v16 }
 0x116   :  { %v313_v20 = vsel %vm303_vm11, nan, %v312_v18 }
 0x117   :  { %v332_v24 = vpack.c.bf16 %v313_v20, %v210_v19 }
 0x119   :  { %792 = vmatmul.mubr.bf16.vlgmr.msra.gmra.mrb[0].mxu0 %v332_v24 }
 0x11a   :  { %816 = vmatpush3.bf16.msra.mxu0 %v879_v21  ;;  %831 = vmatprep.mubr.msk.bf16.mxu0 %vm1020_vm0, %v1019_v4 }
 0x11b   :  { %817 = vmatprep.subr.bf16.mxu0 %v1019_v4 }
 0x11e   :  { %818 = vmatpush3.bf16.msra.mxu0 %v880_v26 }
 0x11f   :  { %819 = vmatprep.subr.bf16.mxu0 %v1019_v4 }
 0x122   :  { %820 = vmatpush3.bf16.msra.mxu0 %v881_v28 }
 0x123   :  { %821 = vmatprep.subr.bf16.mxu0 %v1019_v4 }
 0x126   :  { %822 = vmatpush3.bf16.msra.mxu0 %v882_v25 }
 0x127   :  { %823 = vmatprep.subr.bf16.mxu0 %v1019_v4 }
 0x12a   :  { %824 = vmatpush3.bf16.msra.mxu0 %v883_v31 }
 0x12b   :  { %825 = vmatprep.subr.bf16.mxu0 %v1019_v4 }
 0x12c   :  { %v526_v29 = vpop.f32.mrb[0].mxu1 }
 0x12d   :  { %v813_v30 = vpop.f32.mrb[1].mxu1 }
 0x12e   :  { %v529_v33 = vpop.f32.mrb[2].mxu1  ;;  %826 = vmatpush3.bf16.msra.mxu0 %v884_v32 }
 0x12f   :  { %v814_v34 = vpop.f32.mrb[3].mxu1  ;;  %827 = vmatprep.subr.bf16.mxu0 %v1019_v4 }
 0x132   :  { %828 = vmatpush3.bf16.msra.mxu0 %v885_v35 }
 0x133   :  { %829 = vmatprep.subr.bf16.mxu0 %v1019_v4 }
 0x136   :  { %830 = vmatpush3.bf16.msra.mxu0 %v886_v36 }
 0x1ec   :  { %v431_v37 = vpop.f32.mrb[0].mxu0 }
 0x1ed   :  { %v527_v40 = vadd.f32 %v526_v29, %v431_v37  ;;  %v793_v41 = vpop.f32.mrb[1].mxu0 }
 0x1ee   :  { %v434_v42 = vpop.f32.mrb[2].mxu0 }
 0x1ef   :  { %v540_v44 = vadd.f32 %v729_v39, %v527_v40  ;;  %v530_v46 = vadd.f32 %v529_v33, %v434_v42  ;;  %v794_v47 = vpop.f32.mrb[3].mxu0 }
 0x1f1   :  { %v541_v22 = vadd.f32 %v729_v39, %v530_v46  ;;  %v542_v23 = vmax.f32 %v540_v44, 0.0 }
 0x1f3   :  { %v543_v48 = vmax.f32 %v541_v22, 0.0 }
 0x1f5   :  { %v544_v43 = vpack.c.bf16 %v543_v48, %v542_v23 }
 0x1f7   :  { %747 = vst [vmem:[#allocation8] sm:$0xff] %v544_v43   ;;  %832 = vmatmul.mubr.bf16.vlgmr.msra.gmra.mrb[4].mxu0 %v544_v43 }
 0x1f8   :  { %972 = shalt.err (!%p969_p0)
}
 0x1f9   :  { %s973_s22 = scalar_lea.hbm %s1302_s9, 128 }
 0x1fa   :  { %p974_p1 = scmp.ne.s32.totalorder %s1302_s9, %s973_s22  ;;  %p977_p2 = scmp.lt.u32.totalorder %s973_s22, %s1302_s9 }
 0x1fc   :  { %p979_p3 = pnand %p977_p2, %p974_p1 }
 0x1fe   :  { %982 = shalt.err (!%p979_p3)
}
 0x1ff   :  { %679 = dma.vmem_to_hbm [thread:$0]  %s674_s19, 128, %s1302_s9, [#allocation4], %s1015_s25, %s1015_s25, %s1016_s26  }
 0x200   :  { %v732_v4 = vld [vmem:[%s1301_s8] ss:$0 sm:$0xff]  ;;  %s1028_s11 = smov [#allocation9]  }
 0x201   :  { %s685_s12 = sshll.u32 %s1028_s11, 4  ;;  %s686_s12 = int_to_ptr.vmem [resolvable:$true] %s685_s12 }
 0x202   :  { %s983_s13 = scalar_lea.vmem %s686_s12, 256  ;;  %p988_p5 = scmp.lt.s32.totalorder %s686_s12, %s686_s12 }
 0x203   :  { %p984_p4 = scmp.ne.s32.totalorder %s686_s12, %s983_s13  ;;  %p989_p6 = scmp.lt.s32.totalorder %s983_s13, %s983_s13 }
 0x205   :  { %p990_p7 = por %p989_p6, %p988_p5 }
 0x207   :  { %p991_p8 = pnand %p990_p7, %p984_p4 }
 0x2ca   :  { %v659_v50 = vpop.f32.mrb[4].mxu0 }
 0x2cb   :  { %v660_v49 = vadd.f32 %v732_v4, %v659_v50  ;;  %v833_v51 = vpop.f32.mrb[5].mxu0 }
 0x2cc   :  { %v662_v52 = vpop.f32.mrb[6].mxu0 }
 0x2cd   :  { %666 = vst [vmem:[#allocation9] sm:$0xff] %v660_v49  ;;  %v663_v53 = vadd.f32 %v732_v4, %v662_v52  ;;  %v834_v54 = vpop.f32.mrb[7].mxu0 }
 0x2cf   :  { %667 = vst [vmem:[#allocation9 + $0x8] sm:$0xff] %v663_v53 }
 0x2d0   :  { %994 = shalt.err (!%p991_p8)
}
 0x2d1   :  { %s995_s25 = scalar_lea.hbm %s1303_s10, 256 }
 0x2d2   :  { %p996_p9 = scmp.ne.s32.totalorder %s1303_s10, %s995_s25  ;;  %p999_p10 = scmp.lt.u32.totalorder %s995_s25, %s1303_s10 }
 0x2d4   :  { %p1001_p11 = pnand %p999_p10, %p996_p9 }
 0x2d6   :  { %1004 = shalt.err (!%p1001_p11)
}
 0x2d7   :  { %s1029_s17 = smov 128   ;;  %s1030_s18 = smov 8  }
 0x2d8   :  { %691 = dma.vmem_to_hbm [thread:$0]  %s686_s12, 256, %s1303_s10, [#allocation10], %s1029_s17, %s1029_s17, %s1030_s18  }
 0x2d9   :  { %1009 = dma.done.wait [#allocation4], 128  }
 0x2da   :  { %1010 = vsyncadd [#allocation4], 4294967168 }
 0x2db   :  { %1011 = dma.done.wait [#allocation10], 256  }
 0x2dc   :  { %1012 = vsyncadd [#allocation10], 4294967040 }
 0x2dd   :  { %698 = vsyncpa [#allocation3], 1 }
 0x2de   :  { %699 = vsyncpa [#allocation6], 1 }
 0x2df   :  { %700 = vsyncpa [#allocation4], 1 }
 0x2e0   :  { %701 = vsyncpa [#allocation10], 1 }

</bundles_post_ra>
